<compile_context>
chip_gen: v5e
topology: v5e:2x2
jax: 0.10.0
libtpu: 0.0.40
codegen_flags: <defaults>
</compile_context>

<pallas_src>
import functools

import jax
import jax.numpy as jnp
from jax.experimental import pallas as pl
from jax.experimental.pallas import tpu as pltpu

LEAKY_SLOPE = 0.01  # nn.LeakyReLU(0.01)


# ---------------------------------------------------------------------------
# Hardware-dependent tiling configuration
# ---------------------------------------------------------------------------
@functools.lru_cache(maxsize=1)
def _hw_config():
    """(tm_cap, tk_cap, tc_cap, vmem_limit_bytes) chosen per TPU generation."""
    vmem = None
    try:
        vmem = pltpu.get_tpu_info().vmem_capacity_bytes
    except Exception:
        pass
    kind = ""
    try:
        kind = jax.devices()[0].device_kind.lower()
    except Exception:
        pass

    if vmem is not None and vmem >= 100 * 1024 * 1024:
        # v5e / v6e: 128 MiB VMEM — use big tiles to amortize per-step overhead.
        # v5e has only 1 vector-store slot / 4x128 MXU: grow M, keep C narrower.
        tc_cap = 1024 if "v5" in kind else 2048
        return 1024, 1024, tc_cap, 96 * 1024 * 1024
    # v7x-class (64 MiB physical) or unknown: keep per-call footprint modest.
    return 512, 1024, 1024, 40 * 1024 * 1024


def _round_up(x, m):
    return ((x + m - 1) // m) * m


def _choose_tile(dim, cap, align):
    """Return (tile, padded_dim): tile | padded_dim, tile % align == 0, tile <= cap.

    Padding waste is bounded by one alignment unit per tile (no rounding of the
    padded dim up to a multiple of the cap).
    """
    d = _round_up(dim, align)
    if d <= cap:
        return d, d
    n_tiles = -(-d // cap)                       # ceil(d / cap)
    tile = _round_up(-(-d // n_tiles), align)    # ceil(d / n_tiles) -> align
    return tile, tile * n_tiles


# ---------------------------------------------------------------------------
# Generic fused Pallas kernel: Y = act(X @ W [+ b])
# ---------------------------------------------------------------------------
def _mm_kernel(x_ref, w_ref, *rest, act, has_bias):
    if has_bias:
        b_ref, o_ref, acc_ref = rest
    else:
        b_ref = None
        o_ref, acc_ref = rest

    k = pl.program_id(2)

    @pl.when(k == 0)
    def _():
        acc_ref[...] = jnp.zeros_like(acc_ref)

    acc_ref[...] += jnp.dot(x_ref[...], w_ref[...],
                            preferred_element_type=jnp.float32)

    @pl.when(k == pl.num_programs(2) - 1)
    def _():
        y = acc_ref[...]
        if has_bias:
            y = y + b_ref[...]
        if act == "leaky_relu":
            y = jnp.maximum(y, LEAKY_SLOPE * y)
        o_ref[...] = y.astype(o_ref.dtype)


def fused_matmul(x2d, w2d, bias=None, act="none", out_dtype=jnp.bfloat16):
    """x2d: (M, K), w2d: (K, C), bias: (C,) or None -> (M, C) in `out_dtype`."""
    M, K = x2d.shape
    Kw, C = w2d.shape
    assert K == Kw, (K, Kw)

    tm_cap, tk_cap, tc_cap, vmem_limit = _hw_config()
    TM, M_pad = _choose_tile(M, tm_cap, 16)    # 16: bf16 sublane pack
    TK, K_pad = _choose_tile(K, tk_cap, 128)
    TC, C_pad = _choose_tile(C, tc_cap, 128)

    # Make sure the 'parallel' axes have >=2 tiles so the grid can shard across
    # v7x's two TensorCores (harmless one extra grid step elsewhere).
    if M_pad // TM == 1 and C_pad // TC == 1 and M_pad >= 32 and M_pad % 32 == 0:
        TM = M_pad // 2

    # bf16 operands on the MXU; zero-padding keeps the contraction exact and the
    # lane/sublane dims aligned (lane-dense, unmasked stores).
    xp = jnp.pad(x2d.astype(jnp.bfloat16), ((0, M_pad - M), (0, K_pad - K)))
    wp = jnp.pad(w2d.astype(jnp.bfloat16), ((0, K_pad - K), (0, C_pad - C)))

    has_bias = bias is not None
    in_specs = [
        pl.BlockSpec((TM, TK), lambda i, j, k: (i, k)),
        pl.BlockSpec((TK, TC), lambda i, j, k: (k, j)),
    ]
    operands = [xp, wp]
    if has_bias:
        bp = jnp.pad(bias.astype(jnp.float32).reshape(1, C),
                     ((0, 0), (0, C_pad - C)))
        in_specs.append(pl.BlockSpec((1, TC), lambda i, j, k: (0, j)))
        operands.append(bp)

    grid = (M_pad // TM, C_pad // TC, K_pad // TK)
    kern = functools.partial(_mm_kernel, act=act, has_bias=has_bias)

    out = pl.pallas_call(
        kern,
        out_shape=jax.ShapeDtypeStruct((M_pad, C_pad), out_dtype),
        grid=grid,
        in_specs=in_specs,
        out_specs=pl.BlockSpec((TM, TC), lambda i, j, k: (i, j)),
        scratch_shapes=[pltpu.VMEM((TM, TC), jnp.float32)],
        compiler_params=pltpu.CompilerParams(
            dimension_semantics=("parallel", "parallel", "arbitrary"),
            vmem_limit_bytes=vmem_limit,
        ),
    )(*operands)
    return out[:M, :C]


# ---------------------------------------------------------------------------
# Conv2d via im2col + fused_matmul (all N samples & spatial positions in M)
# ---------------------------------------------------------------------------
def _im2col(x, k, stride, pad):
    """x: (N,H,W,C) (call with bf16 to halve patch-construction traffic)."""
    N, H, W, C = x.shape
    xp = jnp.pad(x, ((0, 0), (pad, pad), (pad, pad), (0, 0)))
    Ho = (H + 2 * pad - k) // stride + 1
    Wo = (W + 2 * pad - k) // stride + 1
    cols = []
    for kh in range(k):
        for kw in range(k):
            cols.append(xp[:, kh:kh + stride * Ho:stride,
                           kw:kw + stride * Wo:stride, :])
    patches = jnp.concatenate(cols, axis=-1)            # (N, Ho, Wo, k*k*C)
    return patches.reshape(N * Ho * Wo, k * k * C), Ho, Wo


def conv2d(x, w, bias=None, *, k, stride, pad, act="none",
           out_dtype=jnp.bfloat16):
    """x: (N,H,W,Cin) NHWC, w: (k,k,Cin,Cout) -> (N,Ho,Wo,Cout)."""
    N, _, _, Cin = x.shape
    Cout = w.shape[-1]
    patches, Ho, Wo = _im2col(x.astype(jnp.bfloat16), k, stride, pad)
    y = fused_matmul(patches, w.reshape(k * k * Cin, Cout), bias, act,
                     out_dtype=out_dtype)
    return y.reshape(N, Ho, Wo, Cout)


def conv2d_small_cout(x, w, *, k, stride, pad, out_dtype=jnp.float32):
    """Conv with tiny Cout (no bias), computed transposed so the spatial dim
    (N*Ho*Wo) lands on lanes instead of padding Cout to 128."""
    N, _, _, Cin = x.shape
    Cout = w.shape[-1]
    patches, Ho, Wo = _im2col(x.astype(jnp.bfloat16), k, stride, pad)  # (M, K)
    w2d_t = w.reshape(k * k * Cin, Cout).T                             # (Cout, K)
    y_t = fused_matmul(w2d_t, patches.T, None, act="none",
                       out_dtype=out_dtype)                            # (Cout, M)
    return y_t.reshape(Cout, N, Ho, Wo).transpose(1, 2, 3, 0)          # NHWC


# ---------------------------------------------------------------------------
# Parameters (deterministic, synthetic; conv weights stored as (kh, kw, Cin, Cout))
# ---------------------------------------------------------------------------
def init_params(key, image_size=16, conv_dim=8, c_dim=5, repeat_num=3,
                classnum=10):
    keys = iter(jax.random.split(key, 2 * repeat_num + 6))

    def wconv(kk, kh, kw, cin, cout, scale=0.05):
        return scale * jax.random.normal(kk, (kh, kw, cin, cout), jnp.float32)

    p = {"main": []}
    cin, cout = 3, conv_dim
    for _ in range(repeat_num):
        w = wconv(next(keys), 4, 4, cin, cout)
        b = 0.05 * jax.random.normal(next(keys), (cout,), jnp.float32)
        p["main"].append((w, b))
        cin, cout = cout, cout * 2
    curr_dim = cin

    k_size = image_size // (2 ** repeat_num)
    p["conv1_w"] = wconv(next(keys), 3, 3, curr_dim, 1)                      # bias=False
    p["conv2_w"] = wconv(next(keys), k_size, k_size, curr_dim, c_dim + 512)  # bias=False
    p["fc_w"] = 0.05 * jax.random.normal(next(keys), (512, classnum), jnp.float32)
    p["fc_b"] = 0.05 * jax.random.normal(next(keys), (classnum,), jnp.float32)
    return p


# ---------------------------------------------------------------------------
# Forward pass (mirrors Discriminator_idcls_cross.forward)
# ---------------------------------------------------------------------------
def discriminator_forward(params, x_nchw, feature=False):
    x = jnp.transpose(x_nchw, (0, 2, 3, 1)).astype(jnp.bfloat16)   # NCHW -> NHWC

    # main: [Conv2d(k=4, s=2, p=1) + LeakyReLU(0.01)] * repeat_num, bf16 outputs
    for (w, b) in params["main"]:
        x = conv2d(x, w, b, k=4, stride=2, pad=1, act="leaky_relu",
                   out_dtype=jnp.bfloat16)
    h = x                                                          # (N, Hf, Wf, curr_dim)
    N = h.shape[0]

    # out_real = conv1(h): 3x3 s1 p1, Cout=1, no bias -> transposed matmul.
    out_real = conv2d_small_cout(h, params["conv1_w"], k=3, stride=1, pad=1,
                                 out_dtype=jnp.float32)[..., 0]    # (N, Hf, Wf)

    # conv2: full-spatial k_size x k_size conv, no bias -> a plain matmul over
    # the flattened feature map.
    k_size = params["conv2_w"].shape[0]
    curr_dim = params["conv2_w"].shape[2]
    c_dim = params["conv2_w"].shape[-1] - 512
    h_flat = h.reshape(N, k_size * k_size * curr_dim)              # (N, K2)
    W2 = params["conv2_w"].reshape(k_size * k_size * curr_dim, c_dim + 512)

    if feature:
        out_aux_full = fused_matmul(h_flat, W2, None, act="none",
                                    out_dtype=jnp.float32)         # (N, c_dim+512)
        out_aux = out_aux_full[:, :c_dim]
        out_feature = out_aux_full[:, c_dim:]                      # last 512 ch
        return out_real, out_aux, out_feature

    # feature=False: fold fc into conv2 (both linear, no activation between):
    #   logits = (h_flat @ W2_feat) @ fc_w + fc_b = h_flat @ (W2_feat @ fc_w) + fc_b
    W_comb = jnp.concatenate([W2[:, :c_dim], W2[:, c_dim:] @ params["fc_w"]],
                             axis=1)                               # (K2, c_dim+classnum)
    b_comb = jnp.concatenate([jnp.zeros((c_dim,), jnp.float32), params["fc_b"]])
    out = fused_matmul(h_flat, W_comb, b_comb, act="none",
                       out_dtype=jnp.float32)                      # (N, c_dim+classnum)
    out_aux = out[:, :c_dim]
    logits = out[:, c_dim:]
    return out_real, out_aux, logits


# ---------------------------------------------------------------------------
if __name__ == "__main__":
    key = jax.random.PRNGKey(0)
    kx, kp = jax.random.split(key)

    N = 2
    image_size, conv_dim, c_dim, repeat_num, classnum = 16, 8, 5, 3, 10

    x = jax.random.normal(kx, (N, 3, image_size, image_size), jnp.float32)  # NCHW
    params = init_params(kp, image_size, conv_dim, c_dim, repeat_num, classnum)

    fwd = jax.jit(functools.partial(discriminator_forward, params))
    out_real, out_aux, logits = fwd(x)
    jax.block_until_ready((out_real, out_aux, logits))

    Hf = image_size // (2 ** repeat_num)
    assert out_real.shape == (N, Hf, Hf), out_real.shape
    assert out_aux.shape == (N, c_dim), out_aux.shape
    assert logits.shape == (N, classnum), logits.shape
    assert bool(jnp.all(jnp.isfinite(out_real)))
    assert bool(jnp.all(jnp.isfinite(out_aux)))
    assert bool(jnp.all(jnp.isfinite(logits)))

    # feature=True path (out_feature = last 512 channels of conv2)
    fwd_feat = jax.jit(functools.partial(discriminator_forward, params,
                                         feature=True))
    r2, a2, feat = fwd_feat(x)
    jax.block_until_ready((r2, a2, feat))
    assert feat.shape == (N, 512), feat.shape
    assert bool(jnp.all(jnp.isfinite(feat)))

    print("KERNEL_OK")
</pallas_src>

<mosaic_0001>
module attributes {stable_mosaic.version = 11 : i64} {
  func.func @_mm_kernel(%arg0: i32, %arg1: i32, %arg2: i32, %arg3: memref<64x128xbf16, #tpu.memory_space<vmem>>, %arg4: memref<128x128xbf16, #tpu.memory_space<vmem>>, %arg5: memref<1x128xf32, #tpu.memory_space<vmem>>, %arg6: memref<64x128xbf16, #tpu.memory_space<vmem>>, %arg7: memref<64x128xf32, #tpu.memory_space<vmem>>) attributes {dimension_semantics = [#tpu.dimension_semantics<parallel>, #tpu.dimension_semantics<parallel>, #tpu.dimension_semantics<arbitrary>], iteration_bounds = array<i64: 2, 1, 1>, scalar_prefetch = 0 : i64, scratch_operands = 1 : i64, tpu.core_type = #tpu.core_type<tc>, window_params = [{transform_indices = @transform_0, window_bounds = array<i64: 64, 128>}, {transform_indices = @transform_1, window_bounds = array<i64: 128, 128>}, {transform_indices = @transform_2, window_bounds = array<i64: 1, 128>}, {transform_indices = @transform_3, window_bounds = array<i64: 64, 128>}]} {
    %c0_i32 = arith.constant 0 : i32
    %0 = arith.cmpi eq, %arg2, %c0_i32 : i32
    %1 = arith.extui %0 : i1 to i32
    %c0_i32_0 = arith.constant 0 : i32
    %2 = arith.cmpi ne, %1, %c0_i32_0 : i32
    scf.if %2 {
      %cst_10 = arith.constant 0.000000e+00 : f32
      %12 = vector.broadcast %cst_10 : f32 to vector<64x128xf32>
      %c0_11 = arith.constant 0 : index
      %c0_12 = arith.constant 0 : index
      %13 = vector.load %arg7[%c0_11, %c0_12] : memref<64x128xf32, #tpu.memory_space<vmem>>, vector<64x128xf32>
      tpu.vector_store %arg7[%c0_11, %c0_12], %12 {strides = array<i32>} : memref<64x128xf32, #tpu.memory_space<vmem>>, vector<64x128xf32>,
    } else {
    }
    %c0 = arith.constant 0 : index
    %c0_1 = arith.constant 0 : index
    %3 = vector.load %arg7[%c0, %c0_1] : memref<64x128xf32, #tpu.memory_space<vmem>>, vector<64x128xf32>
    %c0_2 = arith.constant 0 : index
    %c0_3 = arith.constant 0 : index
    %4 = vector.load %arg3[%c0_2, %c0_3] : memref<64x128xbf16, #tpu.memory_space<vmem>>, vector<64x128xbf16>
    %c0_4 = arith.constant 0 : index
    %c0_5 = arith.constant 0 : index
    %5 = vector.load %arg4[%c0_4, %c0_5] : memref<128x128xbf16, #tpu.memory_space<vmem>>, vector<128x128xbf16>
    %cst = arith.constant dense<0.000000e+00> : vector<64x128xf32>
    %6 = tpu.matmul %4, %5, %cst {dimension_numbers = #tpu.dot_dimension_numbers<[1], [0], [0], [1], [0, 0, 1, 1], [], []>} : vector<64x128xbf16>, vector<128x128xbf16>, vector<64x128xf32> -> vector<64x128xf32>
    %7 = arith.addf %3, %6 : vector<64x128xf32>
    %c0_6 = arith.constant 0 : index
    %c0_7 = arith.constant 0 : index
    %8 = vector.load %arg7[%c0_6, %c0_7] : memref<64x128xf32, #tpu.memory_space<vmem>>, vector<64x128xf32>
    tpu.vector_store %arg7[%c0_6, %c0_7], %7 {strides = array<i32>} : memref<64x128xf32, #tpu.memory_space<vmem>>, vector<64x128xf32>,
    %c0_i32_8 = arith.constant 0 : i32
    %9 = arith.cmpi eq, %arg2, %c0_i32_8 : i32
    %10 = arith.extui %9 : i1 to i32
    %c0_i32_9 = arith.constant 0 : i32
    %11 = arith.cmpi ne, %10, %c0_i32_9 : i32
    scf.if %11 {
      %c0_10 = arith.constant 0 : index
      %c0_11 = arith.constant 0 : index
      %12 = vector.load %arg7[%c0_10, %c0_11] : memref<64x128xf32, #tpu.memory_space<vmem>>, vector<64x128xf32>
      %c0_12 = arith.constant 0 : index
      %c0_13 = arith.constant 0 : index
      %13 = vector.load %arg5[%c0_12, %c0_13] : memref<1x128xf32, #tpu.memory_space<vmem>>, vector<1x128xf32>
      %14 = vector.broadcast %13 : vector<1x128xf32> to vector<64x128xf32>
      %15 = arith.addf %12, %14 : vector<64x128xf32>
      %cst_14 = arith.constant 0.00999999977 : f32
      %16 = vector.broadcast %cst_14 : f32 to vector<64x128xf32>
      %17 = arith.mulf %16, %15 : vector<64x128xf32>
      %18 = arith.maximumf %15, %17 : vector<64x128xf32>
      %19 = arith.truncf %18 : vector<64x128xf32> to vector<64x128xbf16>
      %c0_15 = arith.constant 0 : index
      %c0_16 = arith.constant 0 : index
      %20 = vector.load %arg6[%c0_15, %c0_16] : memref<64x128xbf16, #tpu.memory_space<vmem>>, vector<64x128xbf16>
      tpu.vector_store %arg6[%c0_15, %c0_16], %19 {strides = array<i32>} : memref<64x128xbf16, #tpu.memory_space<vmem>>, vector<64x128xbf16>,
    } else {
    }
    return
  }
  func.func @transform_0(%arg0: i32, %arg1: i32, %arg2: i32) -> (i32, i32) {
    %c0_i32 = arith.constant 0 : i32
    return %arg0, %arg2 : i32, i32
  }
  func.func @transform_1(%arg0: i32, %arg1: i32, %arg2: i32) -> (i32, i32) {
    %c0_i32 = arith.constant 0 : i32
    return %arg2, %arg1 : i32, i32
  }
  func.func @transform_2(%arg0: i32, %arg1: i32, %arg2: i32) -> (i32, i32) {
    %c0_i32 = arith.constant 0 : i32
    %c0_i32_0 = arith.constant 0 : i32
    return %c0_i32, %arg1 : i32, i32
  }
  func.func @transform_3(%arg0: i32, %arg1: i32, %arg2: i32) -> (i32, i32) {
    %c0_i32 = arith.constant 0 : i32
    return %arg0, %arg1 : i32, i32
  }
}

module attributes {stable_mosaic.version = 11 : i64} {
  func.func @_mm_kernel(%arg0: i32, %arg1: i32, %arg2: i32, %arg3: memref<16x128xbf16, #tpu.memory_space<vmem>>, %arg4: memref<128x128xbf16, #tpu.memory_space<vmem>>, %arg5: memref<1x128xf32, #tpu.memory_space<vmem>>, %arg6: memref<16x128xbf16, #tpu.memory_space<vmem>>, %arg7: memref<16x128xf32, #tpu.memory_space<vmem>>) attributes {dimension_semantics = [#tpu.dimension_semantics<parallel>, #tpu.dimension_semantics<parallel>, #tpu.dimension_semantics<arbitrary>], iteration_bounds = array<i64: 2, 1, 1>, scalar_prefetch = 0 : i64, scratch_operands = 1 : i64, tpu.core_type = #tpu.core_type<tc>, window_params = [{transform_indices = @transform_0, window_bounds = array<i64: 16, 128>}, {transform_indices = @transform_1, window_bounds = array<i64: 128, 128>}, {transform_indices = @transform_2, window_bounds = array<i64: 1, 128>}, {transform_indices = @transform_3, window_bounds = array<i64: 16, 128>}]} {
    %c0_i32 = arith.constant 0 : i32
    %0 = arith.cmpi eq, %arg2, %c0_i32 : i32
    %1 = arith.extui %0 : i1 to i32
    %c0_i32_0 = arith.constant 0 : i32
    %2 = arith.cmpi ne, %1, %c0_i32_0 : i32
    scf.if %2 {
      %cst_10 = arith.constant 0.000000e+00 : f32
      %12 = vector.broadcast %cst_10 : f32 to vector<16x128xf32>
      %c0_11 = arith.constant 0 : index
      %c0_12 = arith.constant 0 : index
      %13 = vector.load %arg7[%c0_11, %c0_12] : memref<16x128xf32, #tpu.memory_space<vmem>>, vector<16x128xf32>
      tpu.vector_store %arg7[%c0_11, %c0_12], %12 {strides = array<i32>} : memref<16x128xf32, #tpu.memory_space<vmem>>, vector<16x128xf32>,
    } else {
    }
    %c0 = arith.constant 0 : index
    %c0_1 = arith.constant 0 : index
    %3 = vector.load %arg7[%c0, %c0_1] : memref<16x128xf32, #tpu.memory_space<vmem>>, vector<16x128xf32>
    %c0_2 = arith.constant 0 : index
    %c0_3 = arith.constant 0 : index
    %4 = vector.load %arg3[%c0_2, %c0_3] : memref<16x128xbf16, #tpu.memory_space<vmem>>, vector<16x128xbf16>
    %c0_4 = arith.constant 0 : index
    %c0_5 = arith.constant 0 : index
    %5 = vector.load %arg4[%c0_4, %c0_5] : memref<128x128xbf16, #tpu.memory_space<vmem>>, vector<128x128xbf16>
    %cst = arith.constant dense<0.000000e+00> : vector<16x128xf32>
    %6 = tpu.matmul %4, %5, %cst {dimension_numbers = #tpu.dot_dimension_numbers<[1], [0], [0], [1], [0, 0, 1, 1], [], []>} : vector<16x128xbf16>, vector<128x128xbf16>, vector<16x128xf32> -> vector<16x128xf32>
    %7 = arith.addf %3, %6 : vector<16x128xf32>
    %c0_6 = arith.constant 0 : index
    %c0_7 = arith.constant 0 : index
    %8 = vector.load %arg7[%c0_6, %c0_7] : memref<16x128xf32, #tpu.memory_space<vmem>>, vector<16x128xf32>
    tpu.vector_store %arg7[%c0_6, %c0_7], %7 {strides = array<i32>} : memref<16x128xf32, #tpu.memory_space<vmem>>, vector<16x128xf32>,
    %c0_i32_8 = arith.constant 0 : i32
    %9 = arith.cmpi eq, %arg2, %c0_i32_8 : i32
    %10 = arith.extui %9 : i1 to i32
    %c0_i32_9 = arith.constant 0 : i32
    %11 = arith.cmpi ne, %10, %c0_i32_9 : i32
    scf.if %11 {
      %c0_10 = arith.constant 0 : index
      %c0_11 = arith.constant 0 : index
      %12 = vector.load %arg7[%c0_10, %c0_11] : memref<16x128xf32, #tpu.memory_space<vmem>>, vector<16x128xf32>
      %c0_12 = arith.constant 0 : index
      %c0_13 = arith.constant 0 : index
      %13 = vector.load %arg5[%c0_12, %c0_13] : memref<1x128xf32, #tpu.memory_space<vmem>>, vector<1x128xf32>
      %14 = vector.broadcast %13 : vector<1x128xf32> to vector<16x128xf32>
      %15 = arith.addf %12, %14 : vector<16x128xf32>
      %cst_14 = arith.constant 0.00999999977 : f32
      %16 = vector.broadcast %cst_14 : f32 to vector<16x128xf32>
      %17 = arith.mulf %16, %15 : vector<16x128xf32>
      %18 = arith.maximumf %15, %17 : vector<16x128xf32>
      %19 = arith.truncf %18 : vector<16x128xf32> to vector<16x128xbf16>
      %c0_15 = arith.constant 0 : index
      %c0_16 = arith.constant 0 : index
      %20 = vector.load %arg6[%c0_15, %c0_16] : memref<16x128xbf16, #tpu.memory_space<vmem>>, vector<16x128xbf16>
      tpu.vector_store %arg6[%c0_15, %c0_16], %19 {strides = array<i32>} : memref<16x128xbf16, #tpu.memory_space<vmem>>, vector<16x128xbf16>,
    } else {
    }
    return
  }
  func.func @transform_0(%arg0: i32, %arg1: i32, %arg2: i32) -> (i32, i32) {
    %c0_i32 = arith.constant 0 : i32
    return %arg0, %arg2 : i32, i32
  }
  func.func @transform_1(%arg0: i32, %arg1: i32, %arg2: i32) -> (i32, i32) {
    %c0_i32 = arith.constant 0 : i32
    return %arg2, %arg1 : i32, i32
  }
  func.func @transform_2(%arg0: i32, %arg1: i32, %arg2: i32) -> (i32, i32) {
    %c0_i32 = arith.constant 0 : i32
    %c0_i32_0 = arith.constant 0 : i32
    return %c0_i32, %arg1 : i32, i32
  }
  func.func @transform_3(%arg0: i32, %arg1: i32, %arg2: i32) -> (i32, i32) {
    %c0_i32 = arith.constant 0 : i32
    return %arg0, %arg1 : i32, i32
  }
}

module attributes {stable_mosaic.version = 11 : i64} {
  func.func @_mm_kernel(%arg0: i32, %arg1: i32, %arg2: i32, %arg3: memref<16x256xbf16, #tpu.memory_space<vmem>>, %arg4: memref<256x128xbf16, #tpu.memory_space<vmem>>, %arg5: memref<1x128xf32, #tpu.memory_space<vmem>>, %arg6: memref<16x128xbf16, #tpu.memory_space<vmem>>, %arg7: memref<16x128xf32, #tpu.memory_space<vmem>>) attributes {dimension_semantics = [#tpu.dimension_semantics<parallel>, #tpu.dimension_semantics<parallel>, #tpu.dimension_semantics<arbitrary>], iteration_bounds = array<i64: 1, 1, 1>, scalar_prefetch = 0 : i64, scratch_operands = 1 : i64, tpu.core_type = #tpu.core_type<tc>, window_params = [{transform_indices = @transform_0, window_bounds = array<i64: 16, 256>}, {transform_indices = @transform_1, window_bounds = array<i64: 256, 128>}, {transform_indices = @transform_2, window_bounds = array<i64: 1, 128>}, {transform_indices = @transform_3, window_bounds = array<i64: 16, 128>}]} {
    %c0_i32 = arith.constant 0 : i32
    %0 = arith.cmpi eq, %arg2, %c0_i32 : i32
    %1 = arith.extui %0 : i1 to i32
    %c0_i32_0 = arith.constant 0 : i32
    %2 = arith.cmpi ne, %1, %c0_i32_0 : i32
    scf.if %2 {
      %cst_10 = arith.constant 0.000000e+00 : f32
      %12 = vector.broadcast %cst_10 : f32 to vector<16x128xf32>
      %c0_11 = arith.constant 0 : index
      %c0_12 = arith.constant 0 : index
      %13 = vector.load %arg7[%c0_11, %c0_12] : memref<16x128xf32, #tpu.memory_space<vmem>>, vector<16x128xf32>
      tpu.vector_store %arg7[%c0_11, %c0_12], %12 {strides = array<i32>} : memref<16x128xf32, #tpu.memory_space<vmem>>, vector<16x128xf32>,
    } else {
    }
    %c0 = arith.constant 0 : index
    %c0_1 = arith.constant 0 : index
    %3 = vector.load %arg7[%c0, %c0_1] : memref<16x128xf32, #tpu.memory_space<vmem>>, vector<16x128xf32>
    %c0_2 = arith.constant 0 : index
    %c0_3 = arith.constant 0 : index
    %4 = vector.load %arg3[%c0_2, %c0_3] : memref<16x256xbf16, #tpu.memory_space<vmem>>, vector<16x256xbf16>
    %c0_4 = arith.constant 0 : index
    %c0_5 = arith.constant 0 : index
    %5 = vector.load %arg4[%c0_4, %c0_5] : memref<256x128xbf16, #tpu.memory_space<vmem>>, vector<256x128xbf16>
    %cst = arith.constant dense<0.000000e+00> : vector<16x128xf32>
    %6 = tpu.matmul %4, %5, %cst {dimension_numbers = #tpu.dot_dimension_numbers<[1], [0], [0], [1], [0, 0, 1, 1], [], []>} : vector<16x256xbf16>, vector<256x128xbf16>, vector<16x128xf32> -> vector<16x128xf32>
    %7 = arith.addf %3, %6 : vector<16x128xf32>
    %c0_6 = arith.constant 0 : index
    %c0_7 = arith.constant 0 : index
    %8 = vector.load %arg7[%c0_6, %c0_7] : memref<16x128xf32, #tpu.memory_space<vmem>>, vector<16x128xf32>
    tpu.vector_store %arg7[%c0_6, %c0_7], %7 {strides = array<i32>} : memref<16x128xf32, #tpu.memory_space<vmem>>, vector<16x128xf32>,
    %c0_i32_8 = arith.constant 0 : i32
    %9 = arith.cmpi eq, %arg2, %c0_i32_8 : i32
    %10 = arith.extui %9 : i1 to i32
    %c0_i32_9 = arith.constant 0 : i32
    %11 = arith.cmpi ne, %10, %c0_i32_9 : i32
    scf.if %11 {
      %c0_10 = arith.constant 0 : index
      %c0_11 = arith.constant 0 : index
      %12 = vector.load %arg7[%c0_10, %c0_11] : memref<16x128xf32, #tpu.memory_space<vmem>>, vector<16x128xf32>
      %c0_12 = arith.constant 0 : index
      %c0_13 = arith.constant 0 : index
      %13 = vector.load %arg5[%c0_12, %c0_13] : memref<1x128xf32, #tpu.memory_space<vmem>>, vector<1x128xf32>
      %14 = vector.broadcast %13 : vector<1x128xf32> to vector<16x128xf32>
      %15 = arith.addf %12, %14 : vector<16x128xf32>
      %cst_14 = arith.constant 0.00999999977 : f32
      %16 = vector.broadcast %cst_14 : f32 to vector<16x128xf32>
      %17 = arith.mulf %16, %15 : vector<16x128xf32>
      %18 = arith.maximumf %15, %17 : vector<16x128xf32>
      %19 = arith.truncf %18 : vector<16x128xf32> to vector<16x128xbf16>
      %c0_15 = arith.constant 0 : index
      %c0_16 = arith.constant 0 : index
      %20 = vector.load %arg6[%c0_15, %c0_16] : memref<16x128xbf16, #tpu.memory_space<vmem>>, vector<16x128xbf16>
      tpu.vector_store %arg6[%c0_15, %c0_16], %19 {strides = array<i32>} : memref<16x128xbf16, #tpu.memory_space<vmem>>, vector<16x128xbf16>,
    } else {
    }
    return
  }
  func.func @transform_0(%arg0: i32, %arg1: i32, %arg2: i32) -> (i32, i32) {
    %c0_i32 = arith.constant 0 : i32
    return %arg0, %arg2 : i32, i32
  }
  func.func @transform_1(%arg0: i32, %arg1: i32, %arg2: i32) -> (i32, i32) {
    %c0_i32 = arith.constant 0 : i32
    return %arg2, %arg1 : i32, i32
  }
  func.func @transform_2(%arg0: i32, %arg1: i32, %arg2: i32) -> (i32, i32) {
    %c0_i32 = arith.constant 0 : i32
    %c0_i32_0 = arith.constant 0 : i32
    return %c0_i32, %arg1 : i32, i32
  }
  func.func @transform_3(%arg0: i32, %arg1: i32, %arg2: i32) -> (i32, i32) {
    %c0_i32 = arith.constant 0 : i32
    return %arg0, %arg1 : i32, i32
  }
}

module attributes {stable_mosaic.version = 11 : i64} {
  func.func @_mm_kernel(%arg0: i32, %arg1: i32, %arg2: i32, %arg3: memref<16x128xbf16, #tpu.memory_space<vmem>>, %arg4: memref<128x128xbf16, #tpu.memory_space<vmem>>, %arg5: memref<1x128xf32, #tpu.memory_space<vmem>>, %arg6: memref<16x128xf32, #tpu.memory_space<vmem>>, %arg7: memref<16x128xf32, #tpu.memory_space<vmem>>) attributes {dimension_semantics = [#tpu.dimension_semantics<parallel>, #tpu.dimension_semantics<parallel>, #tpu.dimension_semantics<arbitrary>], iteration_bounds = array<i64: 1, 1, 1>, scalar_prefetch = 0 : i64, scratch_operands = 1 : i64, tpu.core_type = #tpu.core_type<tc>, window_params = [{transform_indices = @transform_0, window_bounds = array<i64: 16, 128>}, {transform_indices = @transform_1, window_bounds = array<i64: 128, 128>}, {transform_indices = @transform_2, window_bounds = array<i64: 1, 128>}, {transform_indices = @transform_3, window_bounds = array<i64: 16, 128>}]} {
    %c0_i32 = arith.constant 0 : i32
    %0 = arith.cmpi eq, %arg2, %c0_i32 : i32
    %1 = arith.extui %0 : i1 to i32
    %c0_i32_0 = arith.constant 0 : i32
    %2 = arith.cmpi ne, %1, %c0_i32_0 : i32
    scf.if %2 {
      %cst_10 = arith.constant 0.000000e+00 : f32
      %12 = vector.broadcast %cst_10 : f32 to vector<16x128xf32>
      %c0_11 = arith.constant 0 : index
      %c0_12 = arith.constant 0 : index
      %13 = vector.load %arg7[%c0_11, %c0_12] : memref<16x128xf32, #tpu.memory_space<vmem>>, vector<16x128xf32>
      tpu.vector_store %arg7[%c0_11, %c0_12], %12 {strides = array<i32>} : memref<16x128xf32, #tpu.memory_space<vmem>>, vector<16x128xf32>,
    } else {
    }
    %c0 = arith.constant 0 : index
    %c0_1 = arith.constant 0 : index
    %3 = vector.load %arg7[%c0, %c0_1] : memref<16x128xf32, #tpu.memory_space<vmem>>, vector<16x128xf32>
    %c0_2 = arith.constant 0 : index
    %c0_3 = arith.constant 0 : index
    %4 = vector.load %arg3[%c0_2, %c0_3] : memref<16x128xbf16, #tpu.memory_space<vmem>>, vector<16x128xbf16>
    %c0_4 = arith.constant 0 : index
    %c0_5 = arith.constant 0 : index
    %5 = vector.load %arg4[%c0_4, %c0_5] : memref<128x128xbf16, #tpu.memory_space<vmem>>, vector<128x128xbf16>
    %cst = arith.constant dense<0.000000e+00> : vector<16x128xf32>
    %6 = tpu.matmul %4, %5, %cst {dimension_numbers = #tpu.dot_dimension_numbers<[1], [0], [0], [1], [0, 0, 1, 1], [], []>} : vector<16x128xbf16>, vector<128x128xbf16>, vector<16x128xf32> -> vector<16x128xf32>
    %7 = arith.addf %3, %6 : vector<16x128xf32>
    %c0_6 = arith.constant 0 : index
    %c0_7 = arith.constant 0 : index
    %8 = vector.load %arg7[%c0_6, %c0_7] : memref<16x128xf32, #tpu.memory_space<vmem>>, vector<16x128xf32>
    tpu.vector_store %arg7[%c0_6, %c0_7], %7 {strides = array<i32>} : memref<16x128xf32, #tpu.memory_space<vmem>>, vector<16x128xf32>,
    %c0_i32_8 = arith.constant 0 : i32
    %9 = arith.cmpi eq, %arg2, %c0_i32_8 : i32
    %10 = arith.extui %9 : i1 to i32
    %c0_i32_9 = arith.constant 0 : i32
    %11 = arith.cmpi ne, %10, %c0_i32_9 : i32
    scf.if %11 {
      %c0_10 = arith.constant 0 : index
      %c0_11 = arith.constant 0 : index
      %12 = vector.load %arg7[%c0_10, %c0_11] : memref<16x128xf32, #tpu.memory_space<vmem>>, vector<16x128xf32>
      %c0_12 = arith.constant 0 : index
      %c0_13 = arith.constant 0 : index
      %13 = vector.load %arg5[%c0_12, %c0_13] : memref<1x128xf32, #tpu.memory_space<vmem>>, vector<1x128xf32>
      %14 = vector.broadcast %13 : vector<1x128xf32> to vector<16x128xf32>
      %15 = arith.addf %12, %14 : vector<16x128xf32>
      %c0_14 = arith.constant 0 : index
      %c0_15 = arith.constant 0 : index
      %16 = vector.load %arg6[%c0_14, %c0_15] : memref<16x128xf32, #tpu.memory_space<vmem>>, vector<16x128xf32>
      tpu.vector_store %arg6[%c0_14, %c0_15], %15 {strides = array<i32>} : memref<16x128xf32, #tpu.memory_space<vmem>>, vector<16x128xf32>,
    } else {
    }
    return
  }
  func.func @transform_0(%arg0: i32, %arg1: i32, %arg2: i32) -> (i32, i32) {
    %c0_i32 = arith.constant 0 : i32
    return %arg0, %arg2 : i32, i32
  }
  func.func @transform_1(%arg0: i32, %arg1: i32, %arg2: i32) -> (i32, i32) {
    %c0_i32 = arith.constant 0 : i32
    return %arg2, %arg1 : i32, i32
  }
  func.func @transform_2(%arg0: i32, %arg1: i32, %arg2: i32) -> (i32, i32) {
    %c0_i32 = arith.constant 0 : i32
    %c0_i32_0 = arith.constant 0 : i32
    return %c0_i32, %arg1 : i32, i32
  }
  func.func @transform_3(%arg0: i32, %arg1: i32, %arg2: i32) -> (i32, i32) {
    %c0_i32 = arith.constant 0 : i32
    return %arg0, %arg1 : i32, i32
  }
}

module attributes {stable_mosaic.version = 11 : i64} {
  func.func @_mm_kernel(%arg0: i32, %arg1: i32, %arg2: i32, %arg3: memref<16x384xbf16, #tpu.memory_space<vmem>>, %arg4: memref<384x128xbf16, #tpu.memory_space<vmem>>, %arg5: memref<16x128xf32, #tpu.memory_space<vmem>>, %arg6: memref<16x128xf32, #tpu.memory_space<vmem>>) attributes {dimension_semantics = [#tpu.dimension_semantics<parallel>, #tpu.dimension_semantics<parallel>, #tpu.dimension_semantics<arbitrary>], iteration_bounds = array<i64: 1, 1, 1>, scalar_prefetch = 0 : i64, scratch_operands = 1 : i64, tpu.core_type = #tpu.core_type<tc>, window_params = [{transform_indices = @transform_0, window_bounds = array<i64: 16, 384>}, {transform_indices = @transform_1, window_bounds = array<i64: 384, 128>}, {transform_indices = @transform_2, window_bounds = array<i64: 16, 128>}]} {
    %c0_i32 = arith.constant 0 : i32
    %0 = arith.cmpi eq, %arg2, %c0_i32 : i32
    %1 = arith.extui %0 : i1 to i32
    %c0_i32_0 = arith.constant 0 : i32
    %2 = arith.cmpi ne, %1, %c0_i32_0 : i32
    scf.if %2 {
      %cst_10 = arith.constant 0.000000e+00 : f32
      %12 = vector.broadcast %cst_10 : f32 to vector<16x128xf32>
      %c0_11 = arith.constant 0 : index
      %c0_12 = arith.constant 0 : index
      %13 = vector.load %arg6[%c0_11, %c0_12] : memref<16x128xf32, #tpu.memory_space<vmem>>, vector<16x128xf32>
      tpu.vector_store %arg6[%c0_11, %c0_12], %12 {strides = array<i32>} : memref<16x128xf32, #tpu.memory_space<vmem>>, vector<16x128xf32>,
    } else {
    }
    %c0 = arith.constant 0 : index
    %c0_1 = arith.constant 0 : index
    %3 = vector.load %arg6[%c0, %c0_1] : memref<16x128xf32, #tpu.memory_space<vmem>>, vector<16x128xf32>
    %c0_2 = arith.constant 0 : index
    %c0_3 = arith.constant 0 : index
    %4 = vector.load %arg3[%c0_2, %c0_3] : memref<16x384xbf16, #tpu.memory_space<vmem>>, vector<16x384xbf16>
    %c0_4 = arith.constant 0 : index
    %c0_5 = arith.constant 0 : index
    %5 = vector.load %arg4[%c0_4, %c0_5] : memref<384x128xbf16, #tpu.memory_space<vmem>>, vector<384x128xbf16>
    %cst = arith.constant dense<0.000000e+00> : vector<16x128xf32>
    %6 = tpu.matmul %4, %5, %cst {dimension_numbers = #tpu.dot_dimension_numbers<[1], [0], [0], [1], [0, 0, 1, 1], [], []>} : vector<16x384xbf16>, vector<384x128xbf16>, vector<16x128xf32> -> vector<16x128xf32>
    %7 = arith.addf %3, %6 : vector<16x128xf32>
    %c0_6 = arith.constant 0 : index
    %c0_7 = arith.constant 0 : index
    %8 = vector.load %arg6[%c0_6, %c0_7] : memref<16x128xf32, #tpu.memory_space<vmem>>, vector<16x128xf32>
    tpu.vector_store %arg6[%c0_6, %c0_7], %7 {strides = array<i32>} : memref<16x128xf32, #tpu.memory_space<vmem>>, vector<16x128xf32>,
    %c0_i32_8 = arith.constant 0 : i32
    %9 = arith.cmpi eq, %arg2, %c0_i32_8 : i32
    %10 = arith.extui %9 : i1 to i32
    %c0_i32_9 = arith.constant 0 : i32
    %11 = arith.cmpi ne, %10, %c0_i32_9 : i32
    scf.if %11 {
      %c0_10 = arith.constant 0 : index
      %c0_11 = arith.constant 0 : index
      %12 = vector.load %arg6[%c0_10, %c0_11] : memref<16x128xf32, #tpu.memory_space<vmem>>, vector<16x128xf32>
      %c0_12 = arith.constant 0 : index
      %c0_13 = arith.constant 0 : index
      %13 = vector.load %arg5[%c0_12, %c0_13] : memref<16x128xf32, #tpu.memory_space<vmem>>, vector<16x128xf32>
      tpu.vector_store %arg5[%c0_12, %c0_13], %12 {strides = array<i32>} : memref<16x128xf32, #tpu.memory_space<vmem>>, vector<16x128xf32>,
    } else {
    }
    return
  }
  func.func @transform_0(%arg0: i32, %arg1: i32, %arg2: i32) -> (i32, i32) {
    %c0_i32 = arith.constant 0 : i32
    return %arg0, %arg2 : i32, i32
  }
  func.func @transform_1(%arg0: i32, %arg1: i32, %arg2: i32) -> (i32, i32) {
    %c0_i32 = arith.constant 0 : i32
    return %arg2, %arg1 : i32, i32
  }
  func.func @transform_2(%arg0: i32, %arg1: i32, %arg2: i32) -> (i32, i32) {
    %c0_i32 = arith.constant 0 : i32
    return %arg0, %arg1 : i32, i32
  }
}

</mosaic_0001>

<bundles_post_ra>
// kernel: discriminator_forward.5
= control target key start
LH: loop header
LB: loop body
LE: loop exit
PB: predicated region body
PF: predicated region fallthrough
CT: control target
= control target key end

     0   :  { %s775_s12 = smov 0   ;;  %s777_s13 = smov 0   ;;  %s845_s0 = inlined_call_operand.vmem [shape: bf16[128,128], index: 0, kind: input, shape index: {}]   ;;  %s846_s1 = inlined_call_operand.vmem [shape: bf16[128,128], index: 1, kind: input, shape index: {}]   ;;  %s847_s2 = inlined_call_operand.vmem [shape: f32[1,128], index: 2, kind: input, shape index: {}]   ;;  %s848_s3 = inlined_call_operand.vmem [shape: bf16[128,128], index: 3, kind: output, shape index: {}]  }
   0x1   :  { %s779_s14 = smov 0  }
   0x2 LB: > { %s32_s15 = sadd.s32 1, %s749_s13  ;;  %p592_p0 = scmp.ge.s32.totalorder %s753_s14, 1  ;;  %s753_s14 = sphi %s779_s14, %s13_s14   ;;  %s749_s13 = sphi %s777_s13, %s850_s13   ;;  %s745_s12 = sphi %s775_s12, %s849_s12  }
   0x3   : > { %p34_p1 = scmp.ge.s32.totalorder %s32_s15, 2  ;;  %p188_p2 = scmp.lt.s32.totalorder %s753_s14, 3 }
   0x5   : > { %s852_s15 = smov (%p34_p1, %s32_s15), 0  ;;  %p189_p3 = pnand %p592_p0, %p188_p2 }
   0x6   : > { %s593_s24 = sshll.u32 (!%p189_p3), %s745_s12, 3 }
   0x7   : > { %192 = sbr.rel (%p189_p3) target bundleno = 195 (0xc3), region = 32  ;;  %p230_p4 = scmp.lt.s32.totalorder (!%p189_p3), %s593_s24, 15 }
   0xc   : > { %v658_v0 = vld [vmem:[%s846_s1 + $0x38] sm:$0xff]  ;;  %v657_v1 = vld [vmem:[%s846_s1 + $0x30] sm:$0xff]  ;;  %v656_v2 = vld [vmem:[%s846_s1 + $0x28] sm:$0xff]  ;;  %s854_s24 = smov (!%p230_p4, %s593_s24), 15 }
   0xd   : > { %375 = vmatpush.bf16.msra.mxu0 %v658_v0  ;;  %682 = vmatpush.bf16.msra.mxu1 %v658_v0  ;;  %v655_v3 = vld [vmem:[%s846_s1 + $0x20] sm:$0xff]  ;;  %v654_v4 = vld [vmem:[%s846_s1 + $0x18] sm:$0xff]  ;;  %v653_v5 = vld [vmem:[%s846_s1 + $0x10] sm:$0xff]  ;;  %s594_s4 = sshll.u32 %s854_s24, 2 }
   0xe   : > { %683 = vmatpush.bf16.msra.mxu2 %v658_v0  ;;  %684 = vmatpush.bf16.msra.mxu3 %v658_v0  ;;  %v652_v6 = vld [vmem:[%s846_s1 + $0x8] sm:$0xff]  ;;  %v651_v7 = vld [vmem:[%s846_s1] sm:$0xff]  ;;  %s236_s9 = scalar_lea.vmem %s845_s0, %s594_s4  ;;  %s257_s17 = scalar_lea.vmem %s848_s3, %s594_s4 }
   0xf   : > { %v647_v8 = vld [vmem:[%s236_s9] sm:$0xff]  ;;  %v648_v9 = vld [vmem:[%s236_s9 + $0x8] sm:$0xff]  ;;  %v649_v10 = vld [vmem:[%s236_s9 + $0x10] sm:$0xff] }
  0x10   : > { %v650_v11 = vld [vmem:[%s236_s9 + $0x18] sm:$0xff]  ;;  %v730_v14 = vld [vmem:[%s847_s2] ss:$0 sm:$0xff] }
  0x11   : > { %376 = vmatpush.bf16.msra.mxu0 %v657_v1  ;;  %685 = vmatpush.bf16.msra.mxu1 %v657_v1 }
  0x12   : > { %686 = vmatpush.bf16.msra.mxu2 %v657_v1  ;;  %687 = vmatpush.bf16.msra.mxu3 %v657_v1 }
  0x15   : > { %377 = vmatpush.bf16.msra.mxu0 %v656_v2  ;;  %688 = vmatpush.bf16.msra.mxu1 %v656_v2 }
  0x16   : > { %689 = vmatpush.bf16.msra.mxu2 %v656_v2  ;;  %690 = vmatpush.bf16.msra.mxu3 %v656_v2 }
  0x19   : > { %378 = vmatpush.bf16.msra.mxu0 %v655_v3  ;;  %691 = vmatpush.bf16.msra.mxu1 %v655_v3 }
  0x1a   : > { %692 = vmatpush.bf16.msra.mxu2 %v655_v3  ;;  %693 = vmatpush.bf16.msra.mxu3 %v655_v3 }
  0x1d   : > { %379 = vmatpush.bf16.msra.mxu0 %v654_v4  ;;  %694 = vmatpush.bf16.msra.mxu1 %v654_v4 }
  0x1e   : > { %695 = vmatpush.bf16.msra.mxu2 %v654_v4  ;;  %696 = vmatpush.bf16.msra.mxu3 %v654_v4 }
  0x21   : > { %380 = vmatpush.bf16.msra.mxu0 %v653_v5  ;;  %697 = vmatpush.bf16.msra.mxu1 %v653_v5 }
  0x22   : > { %698 = vmatpush.bf16.msra.mxu2 %v653_v5  ;;  %699 = vmatpush.bf16.msra.mxu3 %v653_v5 }
  0x25   : > { %381 = vmatpush.bf16.msra.mxu0 %v652_v6  ;;  %700 = vmatpush.bf16.msra.mxu1 %v652_v6 }
  0x26   : > { %701 = vmatpush.bf16.msra.mxu2 %v652_v6  ;;  %702 = vmatpush.bf16.msra.mxu3 %v652_v6 }
  0x29   : > { %382 = vmatpush.bf16.msra.mxu0 %v651_v7  ;;  %703 = vmatpush.bf16.msra.mxu1 %v651_v7 }
  0x2a   : > { %704 = vmatpush.bf16.msra.mxu2 %v651_v7  ;;  %705 = vmatpush.bf16.msra.mxu3 %v651_v7 }
  0x2c   : > { %383 = vmatmul.bf16.vlgmr.msra.gmra.mxu0 %v647_v8  ;;  %388 = vmatmul.bf16.vlgmr.msra.gmra.mxu1 %v648_v9 }
  0x2d   : > { %393 = vmatmul.bf16.vlgmr.msra.gmra.mxu2 %v649_v10  ;;  %398 = vmatmul.bf16.vlgmr.msra.gmra.mxu3 %v650_v11 }
  0xa9   : > { %v384_v12 = vpop.f32.mrf.mxu0  ;;  %v389_v13 = vpop.f32.mrf.mxu1 }
  0xaa   : > { %v435_v15 = vadd.f32 %v730_v14, %v384_v12  ;;  %v437_v16 = vadd.f32 %v730_v14, %v389_v13 }
  0xac   : > { %v443_v21 = vmul.f32 0.01, %v435_v15  ;;  %v445_v22 = vmul.f32 0.01, %v437_v16 }
  0xae   : > { %v451_v29 = vmax.f32 %v435_v15, %v443_v21  ;;  %v453_v30 = vmax.f32 %v437_v16, %v445_v22 }
  0xb0   : > { %v394_v17 = vpop.f32.mrf.mxu2  ;;  %v399_v18 = vpop.f32.mrf.mxu3 }
  0xb1   : > { %v386_v19 = vpop.f32.mrf.mxu0  ;;  %v391_v20 = vpop.f32.mrf.mxu1  ;;  %v439_v27 = vadd.f32 %v730_v14, %v394_v17  ;;  %v441_v28 = vadd.f32 %v730_v14, %v399_v18 }
  0xb2   : > { %v436_v23 = vadd.f32 %v730_v14, %v386_v19  ;;  %v438_v24 = vadd.f32 %v730_v14, %v391_v20 }
  0xb3   : > { %v447_v37 = vmul.f32 0.01, %v439_v27  ;;  %v449_v38 = vmul.f32 0.01, %v441_v28 }
  0xb4   : > { %v444_v25 = vmul.f32 0.01, %v436_v23  ;;  %v446_v26 = vmul.f32 0.01, %v438_v24 }
  0xb5   : > { %v455_v43 = vmax.f32 %v439_v27, %v447_v37  ;;  %v457_v44 = vmax.f32 %v441_v28, %v449_v38 }
  0xb6   : > { %v452_v31 = vmax.f32 %v436_v23, %v444_v25  ;;  %v454_v32 = vmax.f32 %v438_v24, %v446_v26 }
  0xb8   : > { %v662_v33 = vpack.c.bf16 %v452_v31, %v451_v29  ;;  %v667_v34 = vpack.c.bf16 %v454_v32, %v453_v30  ;;  %v396_v35 = vpop.f32.mrf.mxu2  ;;  %v401_v36 = vpop.f32.mrf.mxu3 }
  0xb9   : > { %v440_v39 = vadd.f32 %v730_v14, %v396_v35  ;;  %v442_v40 = vadd.f32 %v730_v14, %v401_v36 }
  0xba   : > { %663 = vst [vmem:[%s257_s17] sm:$0xff] %v662_v33  }
  0xbb   : > { %679 = vst [vmem:[%s257_s17 + $0x8] sm:$0xff] %v667_v34   ;;  %v448_v41 = vmul.f32 0.01, %v440_v39  ;;  %v450_v42 = vmul.f32 0.01, %v442_v40 }
  0xbd   : > { %v456_v45 = vmax.f32 %v440_v39, %v448_v41  ;;  %v458_v46 = vmax.f32 %v442_v40, %v450_v42 }
  0xbf   : > { %v672_v47 = vpack.c.bf16 %v456_v45, %v455_v43  ;;  %v677_v48 = vpack.c.bf16 %v458_v46, %v457_v44 }
  0xc1   : > { %680 = vst [vmem:[%s257_s17 + $0x10] sm:$0xff] %v672_v47  }
  0xc2   : > { %681 = vst [vmem:[%s257_s17 + $0x18] sm:$0xff] %v677_v48  }
  0xc3 PF: > { %s13_s14 = sadd.s32 1, %s753_s14   ;;  %s849_s12 = smov %s749_s13 }
  0xc4   : > { %p10_p5 = scmp.ge.s32.totalorder %s13_s14, 4   ;;  %s850_s13 = smov %s852_s15 }
  0xc6   :  { %12 = sbr.rel (!%p10_p5) target bundleno = 2 (0x2), region = 76 }

// kernel: discriminator_forward.6
= control target key start
LH: loop header
LB: loop body
LE: loop exit
PB: predicated region body
PF: predicated region fallthrough
CT: control target
= control target key end

     0   :  { %s619_s12 = smov 0   ;;  %s621_s13 = smov 0   ;;  %s679_s0 = inlined_call_operand.vmem [shape: bf16[32,128], index: 0, kind: input, shape index: {}]   ;;  %s680_s1 = inlined_call_operand.vmem [shape: bf16[128,128], index: 1, kind: input, shape index: {}]   ;;  %s681_s2 = inlined_call_operand.vmem [shape: f32[1,128], index: 2, kind: input, shape index: {}]   ;;  %s682_s3 = inlined_call_operand.vmem [shape: bf16[32,128], index: 3, kind: output, shape index: {}]  }
   0x1   :  { %s623_s14 = smov 0  }
   0x2 LB: > { %s32_s15 = sadd.s32 1, %s593_s13  ;;  %p493_p0 = scmp.ge.s32.totalorder %s597_s14, 1  ;;  %s597_s14 = sphi %s623_s14, %s13_s14   ;;  %s593_s13 = sphi %s621_s13, %s684_s13   ;;  %s589_s12 = sphi %s619_s12, %s683_s12  }
   0x3   : > { %p34_p1 = scmp.ge.s32.totalorder %s32_s15, 2  ;;  %p188_p2 = scmp.lt.s32.totalorder %s597_s14, 3 }
   0x5   : > { %s686_s15 = smov (%p34_p1, %s32_s15), 0  ;;  %p189_p3 = pnand %p493_p0, %p188_p2 }
   0x6   : > { %s494_s24 = sshll.u32 (!%p189_p3), %s589_s12, 1 }
   0x7   : > { %192 = sbr.rel (%p189_p3) target bundleno = 187 (0xbb), region = 32  ;;  %p230_p4 = scmp.lt.s32.totalorder (!%p189_p3), %s494_s24, 3 }
   0xc   : > { %v544_v0 = vld [vmem:[%s680_s1 + $0x38] sm:$0xff]  ;;  %v543_v1 = vld [vmem:[%s680_s1 + $0x30] sm:$0xff]  ;;  %v542_v2 = vld [vmem:[%s680_s1 + $0x28] sm:$0xff]  ;;  %s688_s24 = smov (!%p230_p4, %s494_s24), 3 }
   0xd   : > { %339 = vmatpush.bf16.msra.mxu0 %v544_v0  ;;  %v541_v3 = vld [vmem:[%s680_s1 + $0x20] sm:$0xff]  ;;  %v540_v4 = vld [vmem:[%s680_s1 + $0x18] sm:$0xff]  ;;  %v539_v5 = vld [vmem:[%s680_s1 + $0x10] sm:$0xff]  ;;  %s495_s4 = sshll.u32 %s688_s24, 2 }
   0xe   : > { %v538_v6 = vld [vmem:[%s680_s1 + $0x8] sm:$0xff]  ;;  %v537_v7 = vld [vmem:[%s680_s1] sm:$0xff]  ;;  %s236_s9 = scalar_lea.vmem %s679_s0, %s495_s4  ;;  %s257_s17 = scalar_lea.vmem %s682_s3, %s495_s4 }
   0xf   : > { %v536_v8 = vld [vmem:[%s236_s9] sm:$0xff] }
  0x10   : > { %v574_v10 = vld [vmem:[%s681_s2] ss:$0 sm:$0xff] }
  0x11   : > { %340 = vmatpush.bf16.msra.mxu0 %v543_v1 }
  0x15   : > { %341 = vmatpush.bf16.msra.mxu0 %v542_v2 }
  0x19   : > { %342 = vmatpush.bf16.msra.mxu0 %v541_v3 }
  0x1d   : > { %343 = vmatpush.bf16.msra.mxu0 %v540_v4 }
  0x21   : > { %344 = vmatpush.bf16.msra.mxu0 %v539_v5 }
  0x25   : > { %345 = vmatpush.bf16.msra.mxu0 %v538_v6 }
  0x29   : > { %346 = vmatpush.bf16.msra.mxu0 %v537_v7 }
  0x2c   : > { %347 = vmatmul.bf16.vlgmr.msra.gmra.mxu0 %v536_v8 }
  0xa9   : > { %v348_v9 = vpop.f32.mrf.mxu0 }
  0xaa   : > { %v366_v11 = vadd.f32 %v574_v10, %v348_v9 }
  0xac   : > { %v368_v13 = vmul.f32 0.01, %v366_v11 }
  0xae   : > { %v370_v16 = vmax.f32 %v366_v11, %v368_v13 }
  0xb1   : > { %v350_v12 = vpop.f32.mrf.mxu0 }
  0xb2   : > { %v367_v14 = vadd.f32 %v574_v10, %v350_v12 }
  0xb4   : > { %v369_v15 = vmul.f32 0.01, %v367_v14 }
  0xb6   : > { %v371_v17 = vmax.f32 %v367_v14, %v369_v15 }
  0xb8   : > { %v548_v18 = vpack.c.bf16 %v371_v17, %v370_v16 }
  0xba   : > { %549 = vst [vmem:[%s257_s17] sm:$0xff] %v548_v18  }
  0xbb PF: > { %s13_s14 = sadd.s32 1, %s597_s14   ;;  %s683_s12 = smov %s593_s13 }
  0xbc   : > { %p10_p5 = scmp.ge.s32.totalorder %s13_s14, 4   ;;  %s684_s13 = smov %s686_s15 }
  0xbe   :  { %12 = sbr.rel (!%p10_p5) target bundleno = 2 (0x2), region = 76 }

// kernel: discriminator_forward.7
= control target key start
LH: loop header
LB: loop body
LE: loop exit
PB: predicated region body
PF: predicated region fallthrough
CT: control target
= control target key end

     0   :  { %s399_s1 = inlined_call_operand.vmem [shape: bf16[256,128], index: 1, kind: input, shape index: {}]   ;;  %s400_s0 = inlined_call_operand.vmem [shape: bf16[16,256], index: 0, kind: input, shape index: {}]   ;;  %s401_s2 = inlined_call_operand.vmem [shape: f32[1,128], index: 2, kind: input, shape index: {}]   ;;  %s402_s3 = inlined_call_operand.vmem [shape: bf16[16,128], index: 3, kind: output, shape index: {}]  }
   0x1   :  { %v298_v0 = vld [vmem:[%s399_s1 + $0x38] sm:$0xff]  ;;  %v297_v2 = vld [vmem:[%s399_s1 + $0x30] sm:$0xff]  ;;  %v296_v4 = vld [vmem:[%s399_s1 + $0x28] sm:$0xff] }
   0x2   :  { %v306_v1 = vld [vmem:[%s399_s1 + $0x78] sm:$0xff]  ;;  %162 = vmatpush.bf16.msra.mxu0 %v298_v0  ;;  %v305_v3 = vld [vmem:[%s399_s1 + $0x70] sm:$0xff]  ;;  %v304_v5 = vld [vmem:[%s399_s1 + $0x68] sm:$0xff] }
   0x3   :  { %176 = vmatpush.bf16.msra.mxu1 %v306_v1  ;;  %v295_v6 = vld [vmem:[%s399_s1 + $0x20] sm:$0xff]  ;;  %v294_v8 = vld [vmem:[%s399_s1 + $0x18] sm:$0xff]  ;;  %v293_v10 = vld [vmem:[%s399_s1 + $0x10] sm:$0xff] }
   0x4   :  { %v303_v7 = vld [vmem:[%s399_s1 + $0x60] sm:$0xff]  ;;  %v302_v9 = vld [vmem:[%s399_s1 + $0x58] sm:$0xff]  ;;  %v301_v11 = vld [vmem:[%s399_s1 + $0x50] sm:$0xff] }
   0x5   :  { %v292_v12 = vld [vmem:[%s399_s1 + $0x8] sm:$0xff]  ;;  %v291_v14 = vld [vmem:[%s399_s1] sm:$0xff] }
   0x6   :  { %163 = vmatpush.bf16.msra.mxu0 %v297_v2  ;;  %v300_v13 = vld [vmem:[%s399_s1 + $0x48] sm:$0xff]  ;;  %v299_v15 = vld [vmem:[%s399_s1 + $0x40] sm:$0xff] }
   0x7   :  { %177 = vmatpush.bf16.msra.mxu1 %v305_v3  ;;  %v219_v16 = vld [vmem:[%s400_s0] sm:$0xf]  ;;  %v290_v17 = vld [vmem:[%s400_s0 + $0x4] sm:$0xf0]  ;;  %v289_v18 = vld [vmem:[%s400_s0 + $0x4] sm:$0xf] }
   0x8   :  { %v221_v19 = vld [vmem:[%s400_s0 + $0x8] sm:$0xf0]  ;;  %v220_v20 = vor.u32 %v290_v17, %v219_v16  ;;  %v312_v25 = vld [vmem:[%s401_s2] ss:$0 sm:$0xff] }
   0x9   :  { %v224_v21 = vor.u32 %v289_v18, %v221_v19 }
   0xa   :  { %164 = vmatpush.bf16.msra.mxu0 %v296_v4 }
   0xb   :  { %178 = vmatpush.bf16.msra.mxu1 %v304_v5 }
   0xe   :  { %165 = vmatpush.bf16.msra.mxu0 %v295_v6 }
   0xf   :  { %179 = vmatpush.bf16.msra.mxu1 %v303_v7 }
  0x12   :  { %166 = vmatpush.bf16.msra.mxu0 %v294_v8 }
  0x13   :  { %180 = vmatpush.bf16.msra.mxu1 %v302_v9 }
  0x16   :  { %167 = vmatpush.bf16.msra.mxu0 %v293_v10 }
  0x17   :  { %181 = vmatpush.bf16.msra.mxu1 %v301_v11 }
  0x1a   :  { %168 = vmatpush.bf16.msra.mxu0 %v292_v12 }
  0x1b   :  { %182 = vmatpush.bf16.msra.mxu1 %v300_v13 }
  0x1e   :  { %169 = vmatpush.bf16.msra.mxu0 %v291_v14 }
  0x1f   :  { %183 = vmatpush.bf16.msra.mxu1 %v299_v15 }
  0x21   :  { %170 = vmatmul.bf16.vlgmr.msra.gmra.mxu0 %v220_v20 }
  0x22   :  { %184 = vmatmul.bf16.vlgmr.msra.gmra.mxu1 %v224_v21 }
  0x9e   :  { %v171_v22 = vpop.f32.mrf.mxu0 }
  0x9f   :  { %v185_v23 = vpop.f32.mrf.mxu1 }
  0xa0   :  { %v186_v24 = vadd.f32 %v185_v23, %v171_v22 }
  0xa2   :  { %v203_v26 = vadd.f32 %v312_v25, %v186_v24 }
  0xa4   :  { %v205_v30 = vmul.f32 0.01, %v203_v26 }
  0xa6   :  { %v173_v27 = vpop.f32.mrf.mxu0  ;;  %v207_v33 = vmax.f32 %v203_v26, %v205_v30 }
  0xa7   :  { %v187_v28 = vpop.f32.mrf.mxu1 }
  0xa8   :  { %v188_v29 = vadd.f32 %v187_v28, %v173_v27 }
  0xaa   :  { %v204_v31 = vadd.f32 %v312_v25, %v188_v29 }
  0xac   :  { %v206_v32 = vmul.f32 0.01, %v204_v31 }
  0xae   :  { %v208_v34 = vmax.f32 %v204_v31, %v206_v32 }
  0xb0   :  { %v310_v35 = vpack.c.bf16 %v208_v34, %v207_v33 }
  0xb2   :  { %311 = vst [vmem:[%s402_s3] sm:$0xff] %v310_v35  }

// kernel: discriminator_forward.9
= control target key start
LH: loop header
LB: loop body
LE: loop exit
PB: predicated region body
PF: predicated region fallthrough
CT: control target
= control target key end

     0   :  { %s231_s1 = inlined_call_operand.vmem [shape: bf16[128,128], index: 1, kind: input, shape index: {}]   ;;  %s232_s2 = inlined_call_operand.vmem [shape: f32[1,128], index: 2, kind: input, shape index: {}]   ;;  %s233_s0 = inlined_call_operand.vmem [shape: bf16[16,128], index: 0, kind: input, shape index: {}]   ;;  %s234_s3 = inlined_call_operand.vmem [shape: f32[16,128], index: 3, kind: output, shape index: {}]  }
   0x1   :  { %v173_v0 = vld [vmem:[%s231_s1 + $0x38] sm:$0xff]  ;;  %v172_v1 = vld [vmem:[%s231_s1 + $0x30] sm:$0xff]  ;;  %v171_v2 = vld [vmem:[%s231_s1 + $0x28] sm:$0xff] }
   0x2   :  { %94 = vmatpush.bf16.msra.mxu0 %v173_v0  ;;  %v170_v3 = vld [vmem:[%s231_s1 + $0x20] sm:$0xff]  ;;  %v169_v4 = vld [vmem:[%s231_s1 + $0x18] sm:$0xff]  ;;  %v168_v5 = vld [vmem:[%s231_s1 + $0x10] sm:$0xff] }
   0x3   :  { %v167_v6 = vld [vmem:[%s231_s1 + $0x8] sm:$0xff]  ;;  %v166_v7 = vld [vmem:[%s231_s1] sm:$0xff] }
   0x4   :  { %v165_v8 = vld [vmem:[%s233_s0] sm:$0xff] }
   0x5   :  { %v174_v9 = vld [vmem:[%s232_s2] ss:$0 sm:$0xff] }
   0x6   :  { %95 = vmatpush.bf16.msra.mxu0 %v172_v1 }
   0xa   :  { %96 = vmatpush.bf16.msra.mxu0 %v171_v2 }
   0xe   :  { %97 = vmatpush.bf16.msra.mxu0 %v170_v3 }
  0x12   :  { %98 = vmatpush.bf16.msra.mxu0 %v169_v4 }
  0x16   :  { %99 = vmatpush.bf16.msra.mxu0 %v168_v5 }
  0x1a   :  { %100 = vmatpush.bf16.msra.mxu0 %v167_v6 }
  0x1e   :  { %101 = vmatpush.bf16.msra.mxu0 %v166_v7 }
  0x21   :  { %102 = vmatmul.bf16.vlgmr.msra.gmra.mxu0 %v165_v8 }
  0x9e   :  { %v103_v10 = vpop.f32.mrf.mxu0 }
  0x9f   :  { %v121_v11 = vadd.f32 %v174_v9, %v103_v10 }
  0xa1   :  { %123 = vst [vmem:[%s234_s3] sm:$0xff] %v121_v11 }
  0xa6   :  { %v105_v12 = vpop.f32.mrf.mxu0 }
  0xa7   :  { %v122_v13 = vadd.f32 %v174_v9, %v105_v12 }
  0xa9   :  { %124 = vst [vmem:[%s234_s3 + $0x8] sm:$0xff] %v122_v13 }

// kernel: discriminator_forward.8
= control target key start
LH: loop header
LB: loop body
LE: loop exit
PB: predicated region body
PF: predicated region fallthrough
CT: control target
= control target key end

     0   :  { %s534_s1 = inlined_call_operand.vmem [shape: bf16[384,128], index: 1, kind: input, shape index: {}]   ;;  %s535_s0 = inlined_call_operand.vmem [shape: bf16[16,384], index: 0, kind: input, shape index: {}]   ;;  %s536_s2 = inlined_call_operand.vmem [shape: f32[16,128], index: 2, kind: output, shape index: {}]  }
   0x1   :  { %v406_v0 = vld [vmem:[%s534_s1 + $0x38] sm:$0xff]  ;;  %v405_v3 = vld [vmem:[%s534_s1 + $0x30] sm:$0xff]  ;;  %v404_v6 = vld [vmem:[%s534_s1 + $0x28] sm:$0xff] }
   0x2   :  { %v414_v1 = vld [vmem:[%s534_s1 + $0x78] sm:$0xff]  ;;  %231 = vmatpush.bf16.msra.mxu0 %v406_v0  ;;  %v413_v4 = vld [vmem:[%s534_s1 + $0x70] sm:$0xff]  ;;  %v412_v7 = vld [vmem:[%s534_s1 + $0x68] sm:$0xff] }
   0x3   :  { %v422_v2 = vld [vmem:[%s534_s1 + $0xb8] sm:$0xff]  ;;  %245 = vmatpush.bf16.msra.mxu1 %v414_v1  ;;  %v421_v5 = vld [vmem:[%s534_s1 + $0xb0] sm:$0xff]  ;;  %v420_v8 = vld [vmem:[%s534_s1 + $0xa8] sm:$0xff] }
   0x4   :  { %259 = vmatpush.bf16.msra.mxu2 %v422_v2  ;;  %v403_v9 = vld [vmem:[%s534_s1 + $0x20] sm:$0xff]  ;;  %v402_v12 = vld [vmem:[%s534_s1 + $0x18] sm:$0xff]  ;;  %v401_v15 = vld [vmem:[%s534_s1 + $0x10] sm:$0xff] }
   0x5   :  { %v411_v10 = vld [vmem:[%s534_s1 + $0x60] sm:$0xff]  ;;  %v410_v13 = vld [vmem:[%s534_s1 + $0x58] sm:$0xff]  ;;  %v409_v16 = vld [vmem:[%s534_s1 + $0x50] sm:$0xff] }
   0x6   :  { %232 = vmatpush.bf16.msra.mxu0 %v405_v3  ;;  %v419_v11 = vld [vmem:[%s534_s1 + $0xa0] sm:$0xff]  ;;  %v418_v14 = vld [vmem:[%s534_s1 + $0x98] sm:$0xff]  ;;  %v417_v17 = vld [vmem:[%s534_s1 + $0x90] sm:$0xff] }
   0x7   :  { %246 = vmatpush.bf16.msra.mxu1 %v413_v4  ;;  %v400_v18 = vld [vmem:[%s534_s1 + $0x8] sm:$0xff]  ;;  %v399_v21 = vld [vmem:[%s534_s1] sm:$0xff]  ;;  %v292_v26 = vld [vmem:[%s535_s0 + $0xc] sm:$0xf0] }
   0x8   :  { %260 = vmatpush.bf16.msra.mxu2 %v421_v5  ;;  %v408_v19 = vld [vmem:[%s534_s1 + $0x48] sm:$0xff]  ;;  %v407_v22 = vld [vmem:[%s534_s1 + $0x40] sm:$0xff]  ;;  %v398_v29 = vld [vmem:[%s535_s0 + $0x10] sm:$0xf0] }
   0x9   :  { %v416_v20 = vld [vmem:[%s534_s1 + $0x88] sm:$0xff]  ;;  %v290_v23 = vld [vmem:[%s535_s0] sm:$0xf]  ;;  %v396_v25 = vld [vmem:[%s535_s0 + $0x4] sm:$0xf] }
   0xa   :  { %233 = vmatpush.bf16.msra.mxu0 %v404_v6  ;;  %v397_v24 = vld [vmem:[%s535_s0 + $0x8] sm:$0xf0]  ;;  %v415_v27 = vld [vmem:[%s534_s1 + $0x80] sm:$0xff]  ;;  %v298_v28 = vld [vmem:[%s535_s0 + $0x8] sm:$0xf]  ;;  %v295_v31 = vor.u32 %v396_v25, %v292_v26 }
   0xb   :  { %247 = vmatpush.bf16.msra.mxu1 %v412_v7  ;;  %v291_v30 = vor.u32 %v397_v24, %v290_v23  ;;  %v299_v32 = vor.u32 %v398_v29, %v298_v28 }
   0xc   :  { %261 = vmatpush.bf16.msra.mxu2 %v420_v8 }
   0xe   :  { %234 = vmatpush.bf16.msra.mxu0 %v403_v9 }
   0xf   :  { %248 = vmatpush.bf16.msra.mxu1 %v411_v10 }
  0x10   :  { %262 = vmatpush.bf16.msra.mxu2 %v419_v11 }
  0x12   :  { %235 = vmatpush.bf16.msra.mxu0 %v402_v12 }
  0x13   :  { %249 = vmatpush.bf16.msra.mxu1 %v410_v13 }
  0x14   :  { %263 = vmatpush.bf16.msra.mxu2 %v418_v14 }
  0x16   :  { %236 = vmatpush.bf16.msra.mxu0 %v401_v15 }
  0x17   :  { %250 = vmatpush.bf16.msra.mxu1 %v409_v16 }
  0x18   :  { %264 = vmatpush.bf16.msra.mxu2 %v417_v17 }
  0x1a   :  { %237 = vmatpush.bf16.msra.mxu0 %v400_v18 }
  0x1b   :  { %251 = vmatpush.bf16.msra.mxu1 %v408_v19 }
  0x1c   :  { %265 = vmatpush.bf16.msra.mxu2 %v416_v20 }
  0x1e   :  { %238 = vmatpush.bf16.msra.mxu0 %v399_v21 }
  0x1f   :  { %252 = vmatpush.bf16.msra.mxu1 %v407_v22 }
  0x20   :  { %266 = vmatpush.bf16.msra.mxu2 %v415_v27 }
  0x21   :  { %239 = vmatmul.bf16.vlgmr.msra.gmra.mxu0 %v291_v30 }
  0x22   :  { %253 = vmatmul.bf16.vlgmr.msra.gmra.mxu1 %v295_v31 }
  0x23   :  { %267 = vmatmul.bf16.vlgmr.msra.gmra.mxu2 %v299_v32 }
  0x9e   :  { %v240_v33 = vpop.f32.mrf.mxu0 }
  0x9f   :  { %v254_v34 = vpop.f32.mrf.mxu1 }
  0xa0   :  { %v255_v35 = vadd.f32 %v254_v34, %v240_v33 }
  0xa6   :  { %v268_v36 = vpop.f32.mrf.mxu2  ;;  %v242_v38 = vpop.f32.mrf.mxu0 }
  0xa7   :  { %v269_v37 = vadd.f32 %v268_v36, %v255_v35  ;;  %v256_v39 = vpop.f32.mrf.mxu1 }
  0xa8   :  { %v257_v40 = vadd.f32 %v256_v39, %v242_v38 }
  0xa9   :  { %282 = vst [vmem:[%s536_s2] sm:$0xff] %v269_v37 }
  0xae   :  { %v270_v41 = vpop.f32.mrf.mxu2 }
  0xaf   :  { %v271_v42 = vadd.f32 %v270_v41, %v257_v40 }
  0xb1   :  { %283 = vst [vmem:[%s536_s2 + $0x8] sm:$0xff] %v271_v42 }

</bundles_post_ra>
